<compile_context>
chip_gen: v5e
topology: v5e:2x2
jax: 0.10.0
libtpu: 0.0.40
codegen_flags: <defaults>
</compile_context>

<pallas_src>
import jax
import jax.numpy as jnp
from jax.experimental import pallas as pl
from jax.experimental.pallas import tpu as pltpu


def control_unit_kernel(cqin_ref, ctx_ref, wcq_ref, bcq_ref, out_ref):
    ctx = ctx_ref[...].astype(jnp.float32)                         # [TB, S, d]

    # Single fused MXU matmul; watt is pre-folded into wcq/bcq in the wrapper,
    # so this already yields cq * watt.
    cq_w = (jnp.dot(cqin_ref[...].astype(jnp.float32), wcq_ref[...],
                    preferred_element_type=jnp.float32)
            + bcq_ref[...])                                        # [TB, d]

    # Logits with S kept on the sublane axis (same layout as ctx) -> no
    # lane<->sublane relayout anywhere in the softmax / weighted-sum chain.
    logits = jnp.sum(cq_w[:, None, :] * ctx, axis=-1, keepdims=True)  # [TB,S,1]

    # Softmax over S with deferred normalization.
    m = jnp.max(logits, axis=1, keepdims=True)                     # [TB, 1, 1]
    e = jnp.exp(logits - m)                                        # [TB, S, 1]
    den = jnp.sum(e, axis=1)                                       # [TB, 1]
    num = jnp.sum(e * ctx, axis=1)                                 # [TB, d]

    out_ref[...] = (num * pl.reciprocal(den, approx=True)).astype(out_ref.dtype)


def control_unit(context, question, control, wcq, bcq, watt, *,
                 tb=None, target_block_bytes=2 * 1024 * 1024):
    """context [B,S,d], question/control [B,d], wcq [2d,d], bcq [1,d], watt [1,d]."""
    B, S, d = context.shape

    # Exact fold: cq is only ever consumed as cq * watt, so fold watt into the
    # Linear weights/bias once in the wrapper (tiny [2d,d] op, outside the
    # HBM-bound kernel).  The attention bias cancels under softmax.
    wcq_eff = (wcq * watt).astype(jnp.float32)                     # [2d, d]
    bcq_eff = (bcq * watt).astype(jnp.float32)                     # [1, d]

    cq_in = jnp.concatenate([control, question], axis=1)           # [B, 2d]

    # Batch tile: ~target_block_bytes of context per grid step (f32 in VMEM),
    # multiple of 8 sublanes, capped so there are still >= ~8 grid steps when
    # the batch allows (pipeline overlap + both v7x TensorCores).
    if tb is None:
        row_bytes = S * d * 4
        tb = max(8, (target_block_bytes // row_bytes) // 8 * 8)
        cap = max(8, ((pl.cdiv(B, 8) + 7) // 8) * 8)
        tb = min(tb, cap)
    if B <= tb:
        tb = B        # single full-array block: no padding, no partial block
    n_blk = pl.cdiv(B, tb)

    out = pl.pallas_call(
        control_unit_kernel,
        out_shape=jax.ShapeDtypeStruct((B, d), jnp.float32),
        grid_spec=pltpu.PrefetchScalarGridSpec(
            num_scalar_prefetch=0,
            grid=(n_blk,),
            in_specs=[
                pl.BlockSpec((tb, 2 * d), lambda i: (i, 0)),       # cq_in
                pl.BlockSpec((tb, S, d), lambda i: (i, 0, 0)),     # context (streamed)
                pl.BlockSpec((2 * d, d), lambda i: (0, 0)),        # folded weights (resident)
                pl.BlockSpec((1, d), lambda i: (0, 0)),            # folded bias (resident)
            ],
            out_specs=pl.BlockSpec((tb, d), lambda i: (i, 0)),
        ),
        compiler_params=pltpu.CompilerParams(
            dimension_semantics=("parallel",),
            # Double-buffered ~2 MiB blocks + temporaries stay well under the
            # v7x 64 MiB physical VMEM; could be raised on v5e/v6e (128 MiB).
            vmem_limit_bytes=32 * 1024 * 1024,
        ),
    )(cq_in, context, wcq_eff, bcq_eff)
    return out


def make_params(d, key):
    """Deterministic synthetic params mirroring xavier_uniform_ / zero bias."""
    k1, k2 = jax.random.split(key)
    # control_question: nn.Linear(2d, d) -> weight [d, 2d], xavier uniform.
    bound_cq = (6.0 / (2 * d + d)) ** 0.5
    w_cq = jax.random.uniform(k1, (d, 2 * d), jnp.float32, -bound_cq, bound_cq)
    wcq = w_cq.T                                  # [2d, d]; rows 0:d act on control
    bcq = jnp.zeros((1, d), jnp.float32)
    # attention: nn.Linear(d, 1) -> weight [1, d], xavier uniform.
    bound_att = (6.0 / (d + 1)) ** 0.5
    watt = jax.random.uniform(k2, (1, d), jnp.float32, -bound_att, bound_att)
    # attention bias is zero-init in the module and cancels exactly under
    # softmax, so it is not materialized / passed to the kernel.
    return wcq, bcq, watt


def reference(context, question, control, wcq, bcq, watt):
    cq = jnp.concatenate([control, question], axis=1) @ wcq + bcq       # [B, d]
    logits = jnp.sum(cq[:, None, :] * context * watt[None, :, :],
                     axis=-1, keepdims=True)                            # [B, S, 1]
    att = jax.nn.softmax(logits, axis=1)
    return jnp.sum(att * context, axis=1)


if __name__ == "__main__":
    B, S, d = 2, 8, 32
    key = jax.random.PRNGKey(0)
    k_ctx, k_q, k_c, k_p = jax.random.split(key, 4)
    context = jax.random.normal(k_ctx, (B, S, d), jnp.float32)
    question = jax.random.normal(k_q, (B, d), jnp.float32)
    control = jax.random.normal(k_c, (B, d), jnp.float32)
    wcq, bcq, watt = make_params(d, k_p)

    out = control_unit(context, question, control, wcq, bcq, watt)
    out = jax.block_until_ready(out)

    ref = reference(context, question, control, wcq, bcq, watt)
    assert out.shape == (B, d)
    # approx=True reciprocal (EUP vrcp) trades ~1e-3 relative error on the
    # softmax normalization for a free execution slot.
    assert jnp.allclose(out, ref, atol=2e-3, rtol=2e-3), float(
        jnp.max(jnp.abs(out - ref)))
    print("KERNEL_OK")
</pallas_src>

<mosaic_0001>
module attributes {stable_mosaic.version = 11 : i64} {
  func.func @control_unit_kernel(%arg0: i32, %arg1: memref<2x64xf32, #tpu.memory_space<vmem>>, %arg2: memref<2x8x32xf32, #tpu.memory_space<vmem>>, %arg3: memref<64x32xf32, #tpu.memory_space<vmem>>, %arg4: memref<1x32xf32, #tpu.memory_space<vmem>>, %arg5: memref<2x32xf32, #tpu.memory_space<vmem>>) attributes {dimension_semantics = [#tpu.dimension_semantics<parallel>], iteration_bounds = array<i64: 1>, scalar_prefetch = 0 : i64, scratch_operands = 0 : i64, tpu.core_type = #tpu.core_type<tc>, window_params = [{transform_indices = @transform_0, window_bounds = array<i64: 2, 64>}, {transform_indices = @transform_1, window_bounds = array<i64: 2, 8, 32>}, {pipeline_mode = #tpu.pipeline_mode<synchronous>, transform_indices = @transform_2, window_bounds = array<i64: 64, 32>}, {pipeline_mode = #tpu.pipeline_mode<synchronous>, transform_indices = @transform_3, window_bounds = array<i64: 1, 32>}, {transform_indices = @transform_4, window_bounds = array<i64: 2, 32>}]} {
    %c0 = arith.constant 0 : index
    %c0_0 = arith.constant 0 : index
    %c0_1 = arith.constant 0 : index
    %0 = vector.load %arg2[%c0, %c0_0, %c0_1] : memref<2x8x32xf32, #tpu.memory_space<vmem>>, vector<2x8x32xf32>
    %c0_2 = arith.constant 0 : index
    %c0_3 = arith.constant 0 : index
    %1 = vector.load %arg1[%c0_2, %c0_3] : memref<2x64xf32, #tpu.memory_space<vmem>>, vector<2x64xf32>
    %c0_4 = arith.constant 0 : index
    %c0_5 = arith.constant 0 : index
    %2 = vector.load %arg3[%c0_4, %c0_5] : memref<64x32xf32, #tpu.memory_space<vmem>>, vector<64x32xf32>
    %cst = arith.constant dense<0.000000e+00> : vector<2x32xf32>
    %3 = tpu.matmul %1, %2, %cst {dimension_numbers = #tpu.dot_dimension_numbers<[1], [0], [0], [1], [0, 0, 1, 1], [], []>} : vector<2x64xf32>, vector<64x32xf32>, vector<2x32xf32> -> vector<2x32xf32>
    %c0_6 = arith.constant 0 : index
    %c0_7 = arith.constant 0 : index
    %4 = vector.load %arg4[%c0_6, %c0_7] : memref<1x32xf32, #tpu.memory_space<vmem>>, vector<1x32xf32>
    %5 = vector.broadcast %4 : vector<1x32xf32> to vector<2x32xf32>
    %6 = arith.addf %3, %5 : vector<2x32xf32>
    %7 = vector.shape_cast %6 : vector<2x32xf32> to vector<2x1x32xf32>
    %8 = vector.broadcast %7 : vector<2x1x32xf32> to vector<2x8x32xf32>
    %9 = arith.mulf %8, %0 : vector<2x8x32xf32>
    %cst_8 = arith.constant dense<0.000000e+00> : vector<2x8xf32>
    %10 = vector.multi_reduction <add>, %9, %cst_8 [2] : vector<2x8x32xf32> to vector<2x8xf32>
    %11 = vector.shape_cast %10 : vector<2x8xf32> to vector<2x8x1xf32>
    %cst_9 = arith.constant dense<0xFF800000> : vector<2x1xf32>
    %12 = vector.multi_reduction <maximumf>, %11, %cst_9 [1] : vector<2x8x1xf32> to vector<2x1xf32>
    %13 = vector.shape_cast %12 : vector<2x1xf32> to vector<2x1x1xf32>
    %14 = vector.broadcast %13 : vector<2x1x1xf32> to vector<2x8x1xf32>
    %15 = arith.subf %11, %14 : vector<2x8x1xf32>
    %16 = math.exp %15 : vector<2x8x1xf32>
    %cst_10 = arith.constant dense<0.000000e+00> : vector<2x1xf32>
    %17 = vector.multi_reduction <add>, %16, %cst_10 [1] : vector<2x8x1xf32> to vector<2x1xf32>
    %18 = vector.broadcast %16 : vector<2x8x1xf32> to vector<2x8x32xf32>
    %19 = arith.mulf %18, %0 : vector<2x8x32xf32>
    %cst_11 = arith.constant dense<0.000000e+00> : vector<2x32xf32>
    %20 = vector.multi_reduction <add>, %19, %cst_11 [1] : vector<2x8x32xf32> to vector<2x32xf32>
    %21 = tpu.reciprocal %17 {approx = true} : vector<2x1xf32> -> vector<2x1xf32>
    %22 = vector.broadcast %21 : vector<2x1xf32> to vector<2x32xf32>
    %23 = arith.mulf %20, %22 : vector<2x32xf32>
    %c0_12 = arith.constant 0 : index
    %c0_13 = arith.constant 0 : index
    %24 = vector.load %arg5[%c0_12, %c0_13] : memref<2x32xf32, #tpu.memory_space<vmem>>, vector<2x32xf32>
    tpu.vector_store %arg5[%c0_12, %c0_13], %23 {strides = array<i32>} : memref<2x32xf32, #tpu.memory_space<vmem>>, vector<2x32xf32>,
    return
  }
  func.func @transform_0(%arg0: i32) -> (i32, i32) {
    %c0_i32 = arith.constant 0 : i32
    %c0_i32_0 = arith.constant 0 : i32
    return %arg0, %c0_i32 : i32, i32
  }
  func.func @transform_1(%arg0: i32) -> (i32, i32, i32) {
    %c0_i32 = arith.constant 0 : i32
    %c0_i32_0 = arith.constant 0 : i32
    %c0_i32_1 = arith.constant 0 : i32
    return %arg0, %c0_i32, %c0_i32_0 : i32, i32, i32
  }
  func.func @transform_2(%arg0: i32) -> (i32, i32) {
    %c0_i32 = arith.constant 0 : i32
    %c0_i32_0 = arith.constant 0 : i32
    %c0_i32_1 = arith.constant 0 : i32
    return %c0_i32, %c0_i32_0 : i32, i32
  }
  func.func @transform_3(%arg0: i32) -> (i32, i32) {
    %c0_i32 = arith.constant 0 : i32
    %c0_i32_0 = arith.constant 0 : i32
    %c0_i32_1 = arith.constant 0 : i32
    return %c0_i32, %c0_i32_0 : i32, i32
  }
  func.func @transform_4(%arg0: i32) -> (i32, i32) {
    %c0_i32 = arith.constant 0 : i32
    %c0_i32_0 = arith.constant 0 : i32
    return %arg0, %c0_i32 : i32, i32
  }
}

</mosaic_0001>

<bundles_post_ra>
// kernel: tpu_custom_call.1
= control target key start
LH: loop header
LB: loop body
LE: loop exit
PB: predicated region body
PF: predicated region fallthrough
CT: control target
= control target key end

     0   :  { %s251_s0 = inlined_call_operand.vmem [shape: f32[2,64], index: 0, kind: input, shape index: {}]   ;;  %s252_s1 = inlined_call_operand.vmem [shape: f32[2,8,32], index: 1, kind: input, shape index: {}]   ;;  %s253_s2 = inlined_call_operand.vmem [shape: f32[64,32], index: 2, kind: input, shape index: {}]   ;;  %s254_s3 = inlined_call_operand.vmem [shape: f32[1,32], index: 3, kind: input, shape index: {}]   ;;  %s255_s4 = inlined_call_operand.hbm [shape: f32[2,32], index: 4, kind: output, shape index: {}]  }
   0x1   :  { %v28_v0 = vld [vmem:[%s253_s2 + $0x38] sm:$0xff]  ;;  %v27_v1 = vld [vmem:[%s253_s2 + $0x30] sm:$0xff]  ;;  %v26_v2 = vld [vmem:[%s253_s2 + $0x28] sm:$0xff] }
   0x2   :  { %45 = vmatpush.msra.mxu0 %v28_v0 }
   0x4   :  { %46 = vmatpush.msra.mxu0 %v27_v1 }
   0x5   :  { %9 = vsyncpa [#allocation3], 0  ;;  %v25_v3 = vld [vmem:[%s253_s2 + $0x20] sm:$0xff]  ;;  %v24_v4 = vld [vmem:[%s253_s2 + $0x18] sm:$0xff]  ;;  %vm33_vm0 = vcmask 523264   ;;  %vm65_vm1 = vcmask 261120  }
   0x6   :  { %47 = vmatpush.msra.mxu0 %v26_v2  ;;  %v23_v5 = vld [vmem:[%s253_s2 + $0x10] sm:$0xff]  ;;  %v22_v6 = vld [vmem:[%s253_s2 + $0x8] sm:$0xff]  ;;  %v21_v7 = vld [vmem:[%s253_s2] sm:$0xff]  ;;  %s136_s13 = sshll.u32 %s255_s4, 4  ;;  %vm124_vm2 = vcmask 1041409   ;;  %vm127_vm3 = vcmask 254976   ;;  %s137_s13 = int_to_ptr.hbm [resolvable:$true] %s136_s13 }
   0x7   :  { %v20_v8 = vld [vmem:[%s251_s0] sm:$0x3]  ;;  %v19_v18 = vld [vmem:[%s252_s1 + $0x8] sm:$0xff] }
   0x8   :  { %48 = vmatpush.msra.mxu0 %v25_v3  ;;  %v147_v9 = vld [vmem:[%s254_s3] ss:$0 sm:$0xff] }
   0x9   :  { %v18_v12 = vld [vmem:[%s252_s1] sm:$0xff]  ;;  %s182_s1 = smov [#allocation2]  }
   0xa   :  { %49 = vmatpush.msra.mxu0 %v24_v4  ;;  %s134_s3 = sshll.u32 %s182_s1, 4  ;;  %s135_s3 = int_to_ptr.vmem [resolvable:$true] %s134_s3 }
   0xc   :  { %50 = vmatpush.msra.mxu0 %v23_v5 }
   0xe   :  { %51 = vmatpush.msra.mxu0 %v22_v6 }
  0x10   :  { %52 = vmatpush.msra.mxu0 %v21_v7 }
  0x11   :  { %145 = vmatmul.msk.f32.vlgmr.msra.gmra.mxu0 %vm33_vm0, %v20_v8 }
  0x8e   :  { %v54_v10 = vpop.f32.mrf.mxu0 }
  0x8f   :  { %v55_v11 = vadd.f32 %v147_v9, %v54_v10 }
  0x91   :  { %v58_v13 = vrot.slane %v55_v11, 1  ;;  %v59_v14 = vperm.slane %v55_v11, 0 }
  0x93   :  { %v63_v15 = vmul.f32 %v59_v14, %v18_v12  ;;  %v60_v16 = vperm.slane %v58_v13, 0 }
  0x95   :  { %v66_v17 = vsel %vm65_vm1, %v63_v15, 0.0  ;;  %v64_v19 = vmul.f32 %v60_v16, %v19_v18 }
  0x96   :  { %67 = vadd.xlane.f32.xlu0 %v66_v17 }
  0x97   :  { %v69_v20 = vsel %vm65_vm1, %v64_v19, 0.0 }
  0x9e   :  { %70 = vadd.xlane.f32.xlu0 %v69_v20 }
 0x109   :  { %v68_v21 = vpop.xlane.xlu0 %67 }
 0x10a   :  { %v72_v22 = vrot.slane %v68_v21, 4 }
 0x10c   :  { %v73_v23 = vmax.f32 %v68_v21, %v72_v22 }
 0x10e   :  { %v74_v24 = vrot.slane %v73_v23, 2 }
 0x110   :  { %v75_v25 = vmax.f32 %v73_v23, %v74_v24 }
 0x111   :  { %v71_v26 = vpop.xlane.xlu0 %70 }
 0x112   :  { %v76_v27 = vrot.slane %v75_v25, 1  ;;  %v78_v28 = vrot.slane %v71_v26, 4 }
 0x114   :  { %v77_v29 = vmax.f32 %v75_v25, %v76_v27  ;;  %v79_v30 = vmax.f32 %v71_v26, %v78_v28 }
 0x116   :  { %v84_v31 = vsub.f32 %v68_v21, %v77_v29  ;;  %v80_v32 = vrot.slane %v79_v30, 2 }
 0x118   :  { %v86_v33 = vmul.f32 1.442695, %v84_v31  ;;  %v81_v34 = vmax.f32 %v79_v30, %v80_v32 }
 0x11a   :  { %148 = vpow2.f32 %v86_v33  ;;  %v82_v35 = vrot.slane %v81_v34, 1 }
 0x11c   :  { %v83_v36 = vmax.f32 %v81_v34, %v82_v35 }
 0x11e   :  { %v85_v37 = vsub.f32 %v71_v26, %v83_v36 }
 0x120   :  { %v149_v38 = vpop.eup %148  ;;  %v88_v39 = vmul.f32 1.442695, %v85_v37 }
 0x121   :  { %v90_v40 = vrot.slane %v149_v38, 4  ;;  %v102_v41 = vmul.f32 %v149_v38, %v18_v12 }
 0x122   :  { %150 = vpow2.f32 %v88_v39 }
 0x123   :  { %v91_v42 = vadd.f32 %v149_v38, %v90_v40  ;;  %v104_v43 = vsel %vm65_vm1, %v102_v41, 0.0 }
 0x124   :  { %v105_v45 = vrot.slane %v104_v43, 4 }
 0x125   :  { %v92_v44 = vrot.slane %v91_v42, 2 }
 0x126   :  { %v106_v50 = vadd.f32 %v105_v45, %v104_v43 }
 0x127   :  { %v93_v46 = vadd.f32 %v92_v44, %v91_v42 }
 0x128   :  { %v151_v47 = vpop.eup %150  ;;  %v107_v56 = vrot.slane %v106_v50, 2 }
 0x129   :  { %v96_v48 = vrot.slane %v151_v47, 4  ;;  %v103_v49 = vmul.f32 %v151_v47, %v19_v18  ;;  %v94_v52 = vrot.slane %v93_v46, 1 }
 0x12a   :  { %v108_v62 = vadd.f32 %v107_v56, %v106_v50 }
 0x12b   :  { %v97_v51 = vadd.f32 %v151_v47, %v96_v48  ;;  %v111_v53 = vsel %vm65_vm1, %v103_v49, 0.0  ;;  %v95_v58 = vadd.f32 %v94_v52, %v93_v46 }
 0x12c   :  { %v112_v54 = vrot.slane %v111_v53, 4  ;;  %v109_v1 = vrot.slane %v108_v62, 1 }
 0x12d   :  { %v98_v55 = vrot.slane %v97_v51, 2  ;;  %152 = vrcp.f32 %v95_v58 }
 0x12e   :  { %v113_v57 = vadd.f32 %v112_v54, %v111_v53  ;;  %v110_v4 = vadd.f32 %v109_v1, %v108_v62 }
 0x12f   :  { %v99_v59 = vadd.f32 %v98_v55, %v97_v51 }
 0x130   :  { %v114_v60 = vrot.slane %v113_v57, 2 }
 0x131   :  { %v100_v61 = vrot.slane %v99_v59, 1 }
 0x132   :  { %v115_v63 = vadd.f32 %v114_v60, %v113_v57 }
 0x133   :  { %v101_v0 = vadd.f32 %v100_v61, %v99_v59  ;;  %v153_v3 = vpop.eup %152 }
 0x134   :  { %v116_v2 = vrot.slane %v115_v63, 1  ;;  %v120_v7 = vmul.f32 %v153_v3, %v110_v4 }
 0x135   :  { %154 = vrcp.f32 %v101_v0 }
 0x136   :  { %v117_v5 = vadd.f32 %v116_v2, %v115_v63 }
 0x13b   :  { %v155_v6 = vpop.eup %154 }
 0x13c   :  { %v121_v8 = vmul.f32 %v155_v6, %v117_v5 }
 0x13e   :  { %v125_v9 = vsel %vm124_vm2, %v121_v8, %v120_v7 }
 0x13f   :  { %128 = vst.msk [vmem:[#allocation2] sm:$0x3] %vm127_vm3, %v125_v9 }
 0x140   :  { %139 = dma.vmem_to_hbm [thread:$0]  %s135_s3, 32, %s137_s13, [#allocation3]  }
 0x141   :  { %180 = dma.done.wait [#allocation3], 32  }
 0x142   :  { %181 = vsyncadd [#allocation3], 4294967264 }
 0x143   :  { %144 = vsyncpa [#allocation3], 1 }

</bundles_post_ra>
